<compile_context>
chip_gen: v7x
topology: tpu7x:2x2x1
jax: 0.10.0
libtpu: 0.0.40
codegen_flags: <defaults>
</compile_context>

<pallas_src>
import jax
import jax.numpy as jnp
from jax import lax
from jax.experimental import pallas as pl
from jax.experimental.pallas import tpu as pltpu


_TARGET_BLOCK_BYTES = 12 * 1024 * 1024   # hidden + mask VMEM per input block
_VMEM_LIMIT_BYTES = 48 * 1024 * 1024     # explicit scoped-VMEM request (all gens)


def _largest_divisor_leq(n, cap):
    cap = max(1, min(n, int(cap)))
    for d in range(cap, 0, -1):
        if n % d == 0:
            return d
    return 1


def _choose_tiles(B, S, H, h_itemsize, mask_bytes_per_bs):
    """Pick (bt, st, ht) block sizes.

    Constraints:
      * ht (last dim)           : multiple of 128, or the full H.
      * st (second-to-last dim) : multiple of 128 when tiling S (covers both the
        8-sublane rule for the hidden block and the 128-lane rule for the
        (B, 1, S) mask layout), or the full S.
      * bt (leading dim)        : any exact divisor of B -> no padded/dead batch
        rows are ever DMA'd; kept <= B//2 when B >= 2 so the batch grid axis
        always yields >= 2 "parallel" blocks for v7x's two TensorCores.
    """
    target = _TARGET_BLOCK_BYTES

    # --- H tile (only needed for very wide hidden sizes) ---------------------
    ht = H
    if H % 128 == 0:
        st_min = min(S, 128)
        per_s_budget = max(1, target // st_min)          # bytes per (b=1, s) element
        if H * h_itemsize + mask_bytes_per_bs > per_s_budget:
            ht = ((per_s_budget - mask_bytes_per_bs) // h_itemsize) // 128 * 128
            ht = max(128, min(ht, H))

    # --- S / B tiles ----------------------------------------------------------
    bs_bytes = ht * h_itemsize + mask_bytes_per_bs       # VMEM per (b, s) element
    row_bytes = S * bs_bytes + 32 * ht                   # + f32 out block (sublane-padded)
    bt_cap = B // 2 if B >= 2 else 1                     # >= 2 batch blocks when B >= 2
    if row_bytes <= target:
        st = S
        bt = _largest_divisor_leq(B, min(bt_cap, target // row_bytes))
    else:
        bt = 1
        st = max(128, (target // (128 * bs_bytes)) * 128)
        if st >= S:
            st = S

    # --- B == 1: no batch parallelism; split H across v7x's two cores --------
    if B == 1 and ht == H and H % 256 == 0:
        ht = H // 2
    return bt, st, ht


def _make_kernel(use_mxu, S, st):
    """Build the kernel body.

    Block shapes seen by the kernel:
      h_ref  : (bt, st, ht)  hidden states, native dtype
      m_ref  : (bt, 1, st)   mask, hidden dtype      (MXU / bf16 path)
               (bt, st, 1)   mask, float32           (VPU / f32 path)
      o_ref  : (bt, 1, ht)   float32 output block, resident across the seq axis
      cnt_ref: (bt, 1, 1)    float32 mask-count accumulator (scratch)
    """
    seq_tail = (S % st) != 0   # static: does the last sequence block run OOB?

    def kernel(h_ref, m_ref, o_ref, cnt_ref):
        k = pl.program_id(2)

        @pl.when(k == 0)
        def _init():
            o_ref[...] = jnp.zeros_like(o_ref)
            cnt_ref[...] = jnp.zeros_like(cnt_ref)

        h = h_ref[...]
        m = m_ref[...]

        if seq_tail:
            # The last sequence block reads past S: those rows are undefined
            # (possibly NaN/Inf).  Zero both the hidden rows and the mask
            # entries of the tail before they can touch the accumulators.
            base = k * st
            ids_h = base + lax.broadcasted_iota(jnp.int32, (1, st, 1), 1)
            h = jnp.where(ids_h < S, h, 0)
            if use_mxu:
                ids_m = base + lax.broadcasted_iota(jnp.int32, (1, 1, st), 2)
                m = jnp.where(ids_m < S, m, 0)
            else:
                m = jnp.where(ids_h < S, m, 0)

        if use_mxu:
            # bf16: single-pass MXU batched matvec with f32 accumulation
            # (exact for bf16 inputs; no Precision.HIGHEST 3-pass decomposition).
            o_ref[...] += jnp.einsum("bqs,bsh->bqh", m, h,
                                     preferred_element_type=jnp.float32)
            cnt_ref[...] += jnp.sum(m.astype(jnp.float32), axis=-1, keepdims=True)
        else:
            # f32 (and other dtypes): exact f32 VPU multiply + sublane reduce.
            hf = h if h.dtype == jnp.float32 else h.astype(jnp.float32)
            mf = m  # already float32 (cast once in the wrapper)
            o_ref[...] += jnp.sum(hf * mf, axis=1, keepdims=True)
            cnt_ref[...] += jnp.sum(mf, axis=1, keepdims=True)

        @pl.when(k == pl.num_programs(2) - 1)
        def _finalize():
            denom = jnp.maximum(cnt_ref[...], 1e-9)     # torch.clamp(min=1e-9)
            o_ref[...] = o_ref[...] * pl.reciprocal(denom, approx=False)

    return kernel


@jax.jit
def mean_pooling(last_hidden_state, attention_mask):
    """Masked mean pooling.  last_hidden_state: (B, S, H); attention_mask: (B, S).

    Returns (B, H) float32, matching PyTorch MeanPooling.forward semantics.
    """
    B, S, H = last_hidden_state.shape
    h_dtype = last_hidden_state.dtype
    use_mxu = h_dtype == jnp.bfloat16

    if use_mxu:
        # Lane-dense mask for the MXU matvec; cast once in the wrapper.
        m = attention_mask.astype(h_dtype).reshape(B, 1, S)
        mask_bytes_per_bs = 8 * h_dtype.itemsize        # (bt,1,st): sublane dim pads 1 -> 8
        h_itemsize = h_dtype.itemsize
    else:
        # Sublane-major f32 mask so it broadcasts over the lane (H) axis on the VPU.
        m = attention_mask.astype(jnp.float32).reshape(B, S, 1)
        mask_bytes_per_bs = 128 * 4                     # (bt,st,1): lane dim pads 1 -> 128
        # Budget the hidden block at f32 width: the kernel upcasts to f32 on the VPU.
        h_itemsize = max(h_dtype.itemsize, 4)

    bt, st, ht = _choose_tiles(B, S, H, h_itemsize, mask_bytes_per_bs)
    nb, nh, nk = B // bt, pl.cdiv(H, ht), pl.cdiv(S, st)

    # Headroom above the nominal 12 MiB blocks for elementwise temporaries.
    blk_bytes = bt * st * (ht * h_itemsize + mask_bytes_per_bs) + bt * 32 * ht
    vmem_limit = min(max(_VMEM_LIMIT_BYTES, 3 * blk_bytes), 128 * 1024 * 1024)

    if use_mxu:
        m_spec = pl.BlockSpec((bt, 1, st), lambda i, j, k: (i, 0, k))
    else:
        m_spec = pl.BlockSpec((bt, st, 1), lambda i, j, k: (i, k, 0))

    out = pl.pallas_call(
        _make_kernel(use_mxu, S, st),
        out_shape=jax.ShapeDtypeStruct((B, 1, H), jnp.float32),
        grid_spec=pltpu.PrefetchScalarGridSpec(
            num_scalar_prefetch=0,
            grid=(nb, nh, nk),
            in_specs=[
                pl.BlockSpec((bt, st, ht), lambda i, j, k: (i, k, j)),
                m_spec,
            ],
            out_specs=pl.BlockSpec((bt, 1, ht), lambda i, j, k: (i, 0, j)),
            scratch_shapes=[pltpu.VMEM((bt, 1, 1), jnp.float32)],
        ),
        compiler_params=pltpu.CompilerParams(
            dimension_semantics=("parallel", "parallel", "arbitrary"),
            vmem_limit_bytes=vmem_limit,
        ),
    )(last_hidden_state, m)

    return out.reshape(B, H)


if __name__ == "__main__":
    key = jax.random.PRNGKey(0)
    k_h, k_m = jax.random.split(key)

    B, S, H = 2, 8, 32
    last_hidden_state = jax.random.normal(k_h, (B, S, H), dtype=jnp.float32)
    # Integer-ish attention mask (0/1), like a tokenizer would produce.
    attention_mask = (jax.random.uniform(k_m, (B, S)) > 0.3).astype(jnp.int32)

    out = mean_pooling(last_hidden_state, attention_mask)
    out = jax.block_until_ready(out)

    # Pure-JAX reference (mirrors the PyTorch forward).
    mf = attention_mask[..., None].astype(jnp.float32)
    ref = jnp.sum(last_hidden_state * mf, axis=1) / jnp.maximum(jnp.sum(mf, axis=1), 1e-9)
    assert out.shape == (B, H)
    assert jnp.allclose(out, ref, atol=1e-5, rtol=1e-4), float(jnp.max(jnp.abs(out - ref)))

    print("KERNEL_OK")
</pallas_src>

<mosaic_0001>
module attributes {stable_mosaic.version = 11 : i64} {
  func.func @kernel(%arg0: i32, %arg1: i32, %arg2: i32, %arg3: memref<1x8x32xf32, #tpu.memory_space<vmem>>, %arg4: memref<1x8x1xf32, #tpu.memory_space<vmem>>, %arg5: memref<1x1x32xf32, #tpu.memory_space<vmem>>, %arg6: memref<1x1x1xf32, #tpu.memory_space<vmem>>) attributes {dimension_semantics = [#tpu.dimension_semantics<parallel>, #tpu.dimension_semantics<parallel>, #tpu.dimension_semantics<arbitrary>], iteration_bounds = array<i64: 2, 1, 1>, scalar_prefetch = 0 : i64, scratch_operands = 1 : i64, tpu.core_type = #tpu.core_type<tc>, window_params = [{transform_indices = @transform_0, window_bounds = array<i64: 1, 8, 32>}, {transform_indices = @transform_1, window_bounds = array<i64: 1, 8, 1>}, {transform_indices = @transform_2, window_bounds = array<i64: 1, 1, 32>}]} {
    %c0_i32 = arith.constant 0 : i32
    %0 = arith.cmpi eq, %arg2, %c0_i32 : i32
    %1 = arith.extui %0 : i1 to i32
    %c0_i32_0 = arith.constant 0 : i32
    %2 = arith.cmpi ne, %1, %c0_i32_0 : i32
    scf.if %2 {
      %cst_21 = arith.constant 0.000000e+00 : f32
      %20 = vector.broadcast %cst_21 : f32 to vector<1x1x32xf32>
      %c0_22 = arith.constant 0 : index
      %c0_23 = arith.constant 0 : index
      %c0_24 = arith.constant 0 : index
      %21 = vector.load %arg5[%c0_22, %c0_23, %c0_24] : memref<1x1x32xf32, #tpu.memory_space<vmem>>, vector<1x1x32xf32>
      tpu.vector_store %arg5[%c0_22, %c0_23, %c0_24], %20 {strides = array<i32>} : memref<1x1x32xf32, #tpu.memory_space<vmem>>, vector<1x1x32xf32>,
      %cst_25 = arith.constant 0.000000e+00 : f32
      %22 = vector.broadcast %cst_25 : f32 to vector<1x1x1xf32>
      %c0_26 = arith.constant 0 : index
      %c0_27 = arith.constant 0 : index
      %c0_28 = arith.constant 0 : index
      %23 = vector.load %arg6[%c0_26, %c0_27, %c0_28] : memref<1x1x1xf32, #tpu.memory_space<vmem>>, vector<1x1x1xf32>
      tpu.vector_store %arg6[%c0_26, %c0_27, %c0_28], %22 {strides = array<i32>} : memref<1x1x1xf32, #tpu.memory_space<vmem>>, vector<1x1x1xf32>,
    } else {
    }
    %c0 = arith.constant 0 : index
    %c0_1 = arith.constant 0 : index
    %c0_2 = arith.constant 0 : index
    %3 = vector.load %arg3[%c0, %c0_1, %c0_2] : memref<1x8x32xf32, #tpu.memory_space<vmem>>, vector<1x8x32xf32>
    %c0_3 = arith.constant 0 : index
    %c0_4 = arith.constant 0 : index
    %c0_5 = arith.constant 0 : index
    %4 = vector.load %arg4[%c0_3, %c0_4, %c0_5] : memref<1x8x1xf32, #tpu.memory_space<vmem>>, vector<1x8x1xf32>
    %c0_6 = arith.constant 0 : index
    %c0_7 = arith.constant 0 : index
    %c0_8 = arith.constant 0 : index
    %5 = vector.load %arg5[%c0_6, %c0_7, %c0_8] : memref<1x1x32xf32, #tpu.memory_space<vmem>>, vector<1x1x32xf32>
    %6 = vector.broadcast %4 : vector<1x8x1xf32> to vector<1x8x32xf32>
    %7 = arith.mulf %3, %6 : vector<1x8x32xf32>
    %cst = arith.constant dense<0.000000e+00> : vector<1x32xf32>
    %8 = vector.multi_reduction <add>, %7, %cst [1] : vector<1x8x32xf32> to vector<1x32xf32>
    %9 = vector.shape_cast %8 : vector<1x32xf32> to vector<1x1x32xf32>
    %10 = arith.addf %5, %9 : vector<1x1x32xf32>
    %c0_9 = arith.constant 0 : index
    %c0_10 = arith.constant 0 : index
    %c0_11 = arith.constant 0 : index
    %11 = vector.load %arg5[%c0_9, %c0_10, %c0_11] : memref<1x1x32xf32, #tpu.memory_space<vmem>>, vector<1x1x32xf32>
    tpu.vector_store %arg5[%c0_9, %c0_10, %c0_11], %10 {strides = array<i32>} : memref<1x1x32xf32, #tpu.memory_space<vmem>>, vector<1x1x32xf32>,
    %c0_12 = arith.constant 0 : index
    %c0_13 = arith.constant 0 : index
    %c0_14 = arith.constant 0 : index
    %12 = vector.load %arg6[%c0_12, %c0_13, %c0_14] : memref<1x1x1xf32, #tpu.memory_space<vmem>>, vector<1x1x1xf32>
    %cst_15 = arith.constant dense<0.000000e+00> : vector<1x1xf32>
    %13 = vector.multi_reduction <add>, %4, %cst_15 [1] : vector<1x8x1xf32> to vector<1x1xf32>
    %14 = vector.shape_cast %13 : vector<1x1xf32> to vector<1x1x1xf32>
    %15 = arith.addf %12, %14 : vector<1x1x1xf32>
    %c0_16 = arith.constant 0 : index
    %c0_17 = arith.constant 0 : index
    %c0_18 = arith.constant 0 : index
    %16 = vector.load %arg6[%c0_16, %c0_17, %c0_18] : memref<1x1x1xf32, #tpu.memory_space<vmem>>, vector<1x1x1xf32>
    tpu.vector_store %arg6[%c0_16, %c0_17, %c0_18], %15 {strides = array<i32>} : memref<1x1x1xf32, #tpu.memory_space<vmem>>, vector<1x1x1xf32>,
    %c0_i32_19 = arith.constant 0 : i32
    %17 = arith.cmpi eq, %arg2, %c0_i32_19 : i32
    %18 = arith.extui %17 : i1 to i32
    %c0_i32_20 = arith.constant 0 : i32
    %19 = arith.cmpi ne, %18, %c0_i32_20 : i32
    scf.if %19 {
      %c0_21 = arith.constant 0 : index
      %c0_22 = arith.constant 0 : index
      %c0_23 = arith.constant 0 : index
      %20 = vector.load %arg6[%c0_21, %c0_22, %c0_23] : memref<1x1x1xf32, #tpu.memory_space<vmem>>, vector<1x1x1xf32>
      %cst_24 = arith.constant 9.99999971E-10 : f32
      %21 = vector.broadcast %cst_24 : f32 to vector<1x1x1xf32>
      %22 = arith.maximumf %20, %21 : vector<1x1x1xf32>
      %c0_25 = arith.constant 0 : index
      %c0_26 = arith.constant 0 : index
      %c0_27 = arith.constant 0 : index
      %23 = vector.load %arg5[%c0_25, %c0_26, %c0_27] : memref<1x1x32xf32, #tpu.memory_space<vmem>>, vector<1x1x32xf32>
      %24 = tpu.reciprocal %22 : vector<1x1x1xf32> -> vector<1x1x1xf32>
      %25 = vector.broadcast %24 : vector<1x1x1xf32> to vector<1x1x32xf32>
      %26 = arith.mulf %23, %25 : vector<1x1x32xf32>
      %c0_28 = arith.constant 0 : index
      %c0_29 = arith.constant 0 : index
      %c0_30 = arith.constant 0 : index
      %27 = vector.load %arg5[%c0_28, %c0_29, %c0_30] : memref<1x1x32xf32, #tpu.memory_space<vmem>>, vector<1x1x32xf32>
      tpu.vector_store %arg5[%c0_28, %c0_29, %c0_30], %26 {strides = array<i32>} : memref<1x1x32xf32, #tpu.memory_space<vmem>>, vector<1x1x32xf32>,
    } else {
    }
    return
  }
  func.func @transform_0(%arg0: i32, %arg1: i32, %arg2: i32) -> (i32, i32, i32) {
    %c0_i32 = arith.constant 0 : i32
    return %arg0, %arg2, %arg1 : i32, i32, i32
  }
  func.func @transform_1(%arg0: i32, %arg1: i32, %arg2: i32) -> (i32, i32, i32) {
    %c0_i32 = arith.constant 0 : i32
    %c0_i32_0 = arith.constant 0 : i32
    return %arg0, %arg2, %c0_i32 : i32, i32, i32
  }
  func.func @transform_2(%arg0: i32, %arg1: i32, %arg2: i32) -> (i32, i32, i32) {
    %c0_i32 = arith.constant 0 : i32
    %c0_i32_0 = arith.constant 0 : i32
    return %arg0, %c0_i32, %arg1 : i32, i32, i32
  }
}

</mosaic_0001>

<bundles_post_ra>
// kernel: mean_pooling.1
= control target key start
LH: loop header
LB: loop body
LE: loop exit
PB: predicated region body
PF: predicated region fallthrough
CT: control target
= control target key end

     0   :  { %7 = vsyncpa [#allocation4], 0  ;;  %s669_s0 = inlined_call_operand.vmem [shape: f32[2,8,32], index: 0, kind: input, shape index: {}]   ;;  %s670_s1 = inlined_call_operand.vmem [shape: f32[2,8,1], index: 1, kind: input, shape index: {}]   ;;  %s671_s2 = inlined_call_operand.hbm [shape: f32[2,1,32], index: 2, kind: output, shape index: {}]  }
   0x1   :  { %9 = vsyncpa [#allocation4 + $0x1], 0  ;;  %s537_s9 = smov 0   ;;  %s539_s10 = smov 0  }
   0x2   :  { %s541_s11 = smov 0   ;;  %s543_s12 = smov 0  }
   0x3   :  { %s545_s13 = smov 0   ;;  %s547_s14 = smov 0  }
   0x4 LB: > { %s369_s15 = sadd.s32 4294967295, %s517_s14   ;;  %s370_s16 = sadd.s32 4294967294, %s517_s14   ;;  %s517_s14 = sphi %s547_s14, %s15_s14   ;;  %s513_s13 = sphi %s545_s13, %s678_s13   ;;  %s509_s12 = sphi %s543_s12, %s677_s12   ;;  %s505_s11 = sphi %s541_s11, %s676_s11   ;;  %s501_s10 = sphi %s539_s10, %s675_s10   ;;  %s497_s9 = sphi %s537_s9, %s674_s9  }
   0x5   : > { %s34_s17 = sadd.s32 1, %s513_s13  ;;  %s101_s18 = sadd.s32 1, %s505_s11 }
   0x6   : > { %p36_p0 = scmp.ge.s32.totalorder %s34_s17, 2  ;;  %p111_p1 = scmp.ne.s32.totalorder %s505_s11, %s501_s10 }
   0x7   : > { %p112_p2 = scmp.eq.s32.totalorder %s369_s15, 1  ;;  %p117_p3 = scmp.ne.s32.totalorder %s501_s10, %s497_s9 }
   0x8   : > { %s680_s17 = smov (%p36_p0, %s34_s17), 0  ;;  %p118_p5 = scmp.eq.s32.totalorder %s370_s16, 1 }
   0x9   : > { %p577_p4 = por %p112_p2, %p111_p1  ;;  %s96_s20 = ssub.s32 %s513_s13, %s680_s17 }
   0xa   : > { %p373_p6 = scmp.ge.s32.totalorder %s517_s14, 1  ;;  %p99_p7 = scmp.eq.s32.totalorder %s96_s20, 0 }
   0xb   : > { %p584_p8 = por %p118_p5, %p117_p3  ;;  %p159_p9 = scmp.lt.s32.totalorder %s517_s14, 3 }
   0xc   : > { %s590_s22 = scalar_select %p99_p7, %s505_s11, %s101_s18  }
   0xd   : > { %p160_p10 = pnand %p373_p6, %p159_p9 }
   0xe   : > { %p192_p11 = scmp.lt.s32.totalorder (!%p160_p10), %s509_s12, 1  ;;  %vm215_vm0 = vcmask (!%p160_p10), 0   ;;  %v519_v0 = vmov (!%p160_p10), 0   ;;  %v520_v1 = vmov (!%p160_p10), 0.0   ;;  %vm238_vm1 = vcmask (!%p160_p10), 7168   ;;  %s190_s28 = sand.u32 (!%p160_p10), 1, %s501_s10  }
   0xf   : > { %163 = sbr.rel (%p160_p10) target bundleno = 209 (0xd1), region = 28  ;;  %436 = vset.pattern.permute.xlu0 (!%p160_p10), %v519_v0  ;;  %216 = vst.msk [vmem:[#allocation2] sm:$0x1] (!%p160_p10), %vm215_vm0, %v520_v1  ;;  %vm213_vm2 = vcmask (!%p160_p10), 253952   ;;  %s601_s29 = scalar_lea.vmem (!%p160_p10), [#allocation3], %s190_s28  ;;  %vm226_vm3 = vcmask (!%p160_p10), 261120   ;;  %v261_v27 = vlaneseq (!%p160_p10) }
  0x10   : > { %214 = vst.msk [vmem:[%s601_s29] sm:$0x1] (!%p160_p10), %vm213_vm2, %v520_v1  ;;  %s376_s5 = sshll.u32 (!%p160_p10), %s509_s12, 4  ;;  %s281_s6 = sshll.u32 (!%p160_p10), %s601_s29, 4  ;;  %s620_s6 = int_to_ptr.vmem [resolvable:$true] %s281_s6 }
  0x11   : > { %v262_v28 = vshrl.u32 (!%p160_p10), %v261_v27, 7  ;;  %s618_s15 = scalar_lea.hbm (!%p160_p10), %s671_s2, %s376_s5  ;;  %s268_s16 = scalar_lea.sflag (!%p160_p10), [#allocation4], %s190_s28 }
  0x12   : > { %s439_s18 = scalar_lea.vmem (!%p160_p10), %s620_s6, 16 }
  0x13   : > { %v263_v29 = vsub.s32 (!%p160_p10), 0, %v262_v28  ;;  %p440_p12 = scmp.ne.s32.totalorder (!%p160_p10), %s620_s6, %s439_s18 }
  0x15   : > { %p441_p13 = pnand (!%p160_p10), %p440_p12, %p577_p4 }
  0x16   : > { %s193_s23 = scalar_select %p192_p11, %s509_s12, 1  ;;  %v237_v9 = vld [vmem:[#allocation2] sm:$0x1] }
  0x17   : > { %v219_v24 = vld [vmem:[%s601_s29] sm:$0x1]  ;;  %p442_p0 = pneg %p441_p13  ;;  %s521_s12 = smov [#allocation3]  }
  0x18   : > { %s374_s24 = sshll.u32 %s193_s23, 3  ;;  %s443_s20 = sshll.u32 %s521_s12, 4  ;;  %s444_s20 = int_to_ptr.vmem [resolvable:$false] %s443_s20 }
  0x19   : > { %s208_s27 = scalar_lea.vmem %s670_s1, %s374_s24  ;;  %s201_s4 = scalar_lea.vmem %s669_s0, %s374_s24 }
  0x1a   : > { %v218_v2 = vld [vmem:[%s208_s27] sm:$0xff]  ;;  %s445_s23 = scalar_lea.vmem %s444_s20, 32  ;;  %p446_p1 = scmp.lt.s32.totalorder %s620_s6, %s444_s20 }
  0x1b   : > { %222 = vperm.xlu0 %436, %v218_v2   ;;  %v239_v3 = vsel %vm238_vm1, %v218_v2, 0.0  ;;  %v217_v15 = vld [vmem:[%s201_s4] sm:$0xff]  ;;  %p447_p2 = scmp.lt.s32.totalorder %s445_s23, %s439_s18 }
  0x1c   : > { %v240_v4 = vrot.slane %v239_v3, 4 }
  0x1d   : > { %p448_p3 = por %p447_p2, %p446_p1 }
  0x1e   : > { %v241_v5 = vadd.f32 %v240_v4, %v239_v3 }
  0x1f   : > { %p449_p5 = pnand %p448_p3, %p442_p0 }
  0x20   : > { %v242_v6 = vrot.slane %v241_v5, 2 }
  0x22   : > { %v243_v7 = vadd.f32 %v242_v6, %v241_v5 }
  0x24   : > { %v244_v8 = vrot.slane %v243_v7, 1 }
  0x26   : > { %v245_v10 = vadd.f32 %v244_v8, %v243_v7 }
  0x28   : > { %v246_v11 = vadd.f32 %v245_v10, %v237_v9 }
  0x2a   : > { %248 = vst.msk [vmem:[#allocation2] sm:$0x1] %vm215_vm0, %v246_v11 }
  0x31   : > { %v252_v12 = vld [vmem:[#allocation2] sm:$0x1] }
  0x32   : > { %v253_v13 = vmax.f32 %v252_v12, 1e-09 }
  0x34   : > { %437 = vrcp.f32 %v253_v13 }
  0x3e   : > { %v438_v14 = vpop.eup %437 }
  0x3f   : > { %258 = vperm.xlu0 %436, %v438_v14  }
  0x9a   : > { %v223_v16 = vpop.permute.xlu0 %222 }
  0x9b   : > { %v225_v17 = vmul.f32 %v223_v16, %v217_v15 }
  0x9d   : > { %v227_v18 = vsel %vm226_vm3, %v225_v17, 0.0 }
  0x9e   : > { %v228_v19 = vrot.slane %v227_v18, 4 }
  0xa0   : > { %v229_v20 = vadd.f32 %v228_v19, %v227_v18 }
  0xa2   : > { %v230_v21 = vrot.slane %v229_v20, 2 }
  0xa4   : > { %v231_v22 = vadd.f32 %v230_v21, %v229_v20 }
  0xa6   : > { %v232_v23 = vrot.slane %v231_v22, 1 }
  0xa8   : > { %v233_v25 = vadd.f32 %v232_v23, %v231_v22 }
  0xaa   : > { %v234_v26 = vadd.f32 %v233_v25, %v219_v24 }
  0xac   : > { %236 = vst.msk [vmem:[%s601_s29] sm:$0x1] %vm213_vm2, %v234_v26 }
  0xb3   : > { %v254_v32 = vld [vmem:[%s601_s29] sm:$0x1] }
  0xbe   : > { %v259_v30 = vpop.permute.xlu0 %258 }
  0xbf   : > { %v264_v31 = vrot.slane %v259_v30, %v263_v29 }
  0xc1   : > { %v265_v33 = vmul.f32 %v264_v31, %v254_v32 }
  0xc3   : > { %266 = vst.msk [vmem:[%s601_s29] sm:$0x1] %vm213_vm2, %v265_v33 }
  0xc4   : > { %452 = shalt.err (!%p449_p5)
}
  0xc5   : > { %s453_s24 = scalar_lea.hbm %s618_s15, 16  ;;  %s457_s27 = scalar_lea.hbm %s671_s2, 32 }
  0xc6   : > { %p454_p6 = scmp.ne.s32.totalorder %s618_s15, %s453_s24  ;;  %p458_p10 = scmp.lt.u32.totalorder %s618_s15, %s671_s2 }
  0xc7   : > { %p459_p11 = scmp.lt.u32.totalorder %s457_s27, %s453_s24  ;;  %p461_p13 = scmp.lt.u32.totalorder %s453_s24, %s618_s15 }
  0xc8   : > { %p455_p7 = pnand %p454_p6, %p577_p4 }
  0xc9   : > { %p460_p12 = por %p459_p11, %p458_p10 }
  0xca   : > { %p456_p9 = pneg %p455_p7 }
  0xcb   : > { %p462_p0 = por %p461_p13, %p460_p12 }
  0xcd   : > { %p463_p1 = pnand %p462_p0, %p456_p9 }
  0xcf   : > { %466 = shalt.err (!%p463_p1)
}
  0xd0   : > { %379 = dma.vmem_to_hbm [thread:$0]  (%p577_p4), %s620_s6, 16, %s618_s15, %s268_s16  }
  0xd1 PF: > { %p385_p2 = scmp.ge.s32.totalorder %s517_s14, 2  ;;  %s293_s30 = sand.u32 1, %s497_s9  }
  0xd2   : > { %s294_s3 = scalar_lea.sflag [#allocation4], %s293_s30 }
  0xd3   : > { %p382_p3 = pnand %p385_p2, %p584_p8 }
  0xd5   : > { %492 = dma.done.wait (!%p382_p3), %s294_s3, 16  }
  0xd6   : > { %494 = vsyncadd (!%p382_p3), %s294_s3, 4294967280  ;;  %s15_s14 = sadd.s32 1, %s517_s14   ;;  %s674_s9 = smov %s501_s10 }
  0xd7   : > { %p12_p5 = scmp.ge.s32.totalorder %s15_s14, 4   ;;  %s675_s10 = smov %s505_s11 }
  0xd8   : > { %s676_s11 = smov %s590_s22  ;;  %s677_s12 = smov %s513_s13 }
  0xd9   : > { %s678_s13 = smov %s680_s17  ;;  %14 = sbr.rel (!%p12_p5) target bundleno = 4 (0x4), region = 74 }
  0xe0   :  { %298 = vsyncpa [#allocation4], 1 }
  0xe1   :  { %300 = vsyncpa [#allocation4 + $0x1], 1 }

</bundles_post_ra>
